<compile_context>
chip_gen: v5e
topology: v5e:2x2
jax: 0.10.0
libtpu: 0.0.40
codegen_flags: <defaults>
</compile_context>

<pallas_src>
import functools

import jax
import jax.numpy as jnp
from jax.experimental import pallas as pl
from jax.experimental.pallas import tpu as pltpu


def _round_up(n, m):
    return ((n + m - 1) // m) * m


def pack_critic_weight(w_pt, xu_dim):
    """Repack the PyTorch Linear weight (xu_dim*xu_dim, z_dim) into the
    lane-dense slab used by the kernel:
        Wm[j, k*xu_pad + i] = W_pt[i*xu_dim + j, k]
    Call once per weight update (hoisted out of the per-step forward)."""
    z_dim = w_pt.shape[-1]
    assert w_pt.shape == (xu_dim * xu_dim, z_dim)
    xu_pad = _round_up(xu_dim, 128)
    wr = w_pt.reshape(xu_dim, xu_dim, z_dim)            # [i, j, k]
    wm = jnp.transpose(wr, (1, 2, 0))                   # [j, k, i]
    wm = jnp.pad(wm, ((0, xu_pad - xu_dim), (0, 0), (0, xu_pad - xu_dim)))
    return wm.reshape(xu_pad, z_dim * xu_pad).astype(jnp.float32)


def _critic_kernel(z_ref, xu_ref, w_ref, o_ref, *, z_dim, xu_pad, n_pad, bt,
                   num_acc):
    # z_ref : SMEM (B, z_dim)              full latent array, scalar reads
    # xu_ref: VMEM (bt*n_pad, xu_pad)      cat([x,u]) rows for bt batch elems
    # w_ref : VMEM (xu_pad, z_dim*xu_pad)  repacked weight slab (resident)
    # o_ref : VMEM (bt*n_pad, xu_pad)
    boff = pl.program_id(0) * bt

    # One MXU matmul covering all bt batch elements:
    #   g[r, k*xu_pad + i] = sum_j xu[r, j] * W_pt[i*xu + j, k]
    g = jnp.dot(xu_ref[...], w_ref[...], preferred_element_type=jnp.float32)

    # Per batch element: out[n, i] = sum_k z[b, k] * g[b*n_pad + n, k*xu_pad + i]
    for b in range(bt):
        gb = g[b * n_pad:(b + 1) * n_pad, :]            # sublane-aligned slice
        parts = [None] * num_acc
        for k in range(z_dim):
            zk = z_ref[boff + b, k]                     # SMEM scalar
            term = gb[:, k * xu_pad:(k + 1) * xu_pad] * zk
            a = k % num_acc
            parts[a] = term if parts[a] is None else parts[a] + term
        acc = parts[0]
        for a in range(1, num_acc):
            acc = acc + parts[a]
        o_ref[b * n_pad:(b + 1) * n_pad, :] = acc.astype(o_ref.dtype)


def critic_forward(z, x, u, wm, *, trim=True):
    """z: (B, z_dim), x: (B, N, x_dim), u: (B, N, u_dim),
    wm: repacked weight from pack_critic_weight().
    Returns gradQ: (B, N, xu_dim) float32 (or padded layout if trim=False)."""
    B, N, x_dim = x.shape
    u_dim = u.shape[-1]
    z_dim = z.shape[-1]
    xu_dim = x_dim + u_dim
    xu_pad = _round_up(xu_dim, 128)
    n_pad = _round_up(N, 8)
    assert wm.shape == (xu_pad, z_dim * xu_pad)
    assert z.shape == (B, z_dim) and u.shape == (B, N, u_dim)

    # At most 2 grid steps: 2 "parallel" steps when B is even (v7x megacore
    # shards them across both TensorCores), otherwise 1 fat step.
    grid_b = 2 if (B >= 2 and B % 2 == 0) else 1
    bt = B // grid_b

    # cat + zero-pad to lane/sublane-dense layout, flattened to 2-D rows.
    xu_cat = jnp.concatenate([x, u], axis=-1).astype(jnp.float32)
    xu_cat = jnp.pad(xu_cat, ((0, 0), (0, n_pad - N), (0, xu_pad - xu_dim)))
    xu_flat = xu_cat.reshape(B * n_pad, xu_pad)

    num_acc = 4 if z_dim >= 8 else (2 if z_dim >= 4 else 1)

    kernel = functools.partial(_critic_kernel, z_dim=z_dim, xu_pad=xu_pad,
                               n_pad=n_pad, bt=bt, num_acc=num_acc)

    out_flat = pl.pallas_call(
        kernel,
        out_shape=jax.ShapeDtypeStruct((B * n_pad, xu_pad), jnp.float32),
        grid=(grid_b,),
        in_specs=[
            pl.BlockSpec(memory_space=pltpu.SMEM),                     # z
            pl.BlockSpec((bt * n_pad, xu_pad), lambda b: (b, 0)),      # xu rows
            pl.BlockSpec((xu_pad, z_dim * xu_pad), lambda b: (0, 0)),  # weight
        ],
        out_specs=pl.BlockSpec((bt * n_pad, xu_pad), lambda b: (b, 0)),
        compiler_params=pltpu.CompilerParams(
            dimension_semantics=("parallel",)),
    )(z.astype(jnp.float32), xu_flat, wm)

    out = out_flat.reshape(B, n_pad, xu_pad)
    if trim:
        # Consumers that accept the padded (n_pad, xu_pad) layout can pass
        # trim=False and skip this extra copy.
        out = out[:, :N, :xu_dim]
    return out


def reference_forward(z, x, u, w_pt):
    """Pure-JAX reference of the PyTorch Critic forward."""
    B = z.shape[0]
    xu_dim = x.shape[-1] + u.shape[-1]
    h = (z @ w_pt.T).reshape(B, xu_dim, xu_dim)          # (B, xu, xu)
    xu_cat = jnp.concatenate([x, u], axis=-1)            # (B, N, xu)
    return jnp.einsum("bij,bnj->bni", h, xu_cat)


if __name__ == "__main__":
    key = jax.random.PRNGKey(0)
    kw, kz, kx, ku = jax.random.split(key, 4)

    B, N = 4, 16
    x_dim, u_dim, z_dim = 4, 2, 8
    xu_dim = x_dim + u_dim

    bound = 1.0 / float(z_dim) ** 0.5
    w_pt = jax.random.uniform(kw, (xu_dim * xu_dim, z_dim), jnp.float32,
                              -bound, bound)
    z = jax.random.normal(kz, (B, z_dim), jnp.float32)
    x = jax.random.normal(kx, (B, N, x_dim), jnp.float32)
    u = jax.random.normal(ku, (B, N, u_dim), jnp.float32)

    # One-time weight repack (hoisted out of the forward pass).
    wm = pack_critic_weight(w_pt, xu_dim)

    fwd = jax.jit(critic_forward)
    out = fwd(z, x, u, wm)
    out = jax.block_until_ready(out)

    ref = reference_forward(z, x, u, w_pt)
    assert out.shape == (B, N, xu_dim)
    assert jnp.allclose(out, ref, atol=1e-4, rtol=1e-4), "mismatch vs reference"

    print("KERNEL_OK")
</pallas_src>

<mosaic_0001>
module attributes {stable_mosaic.version = 11 : i64} {
  func.func @_critic_kernel(%arg0: i32, %arg1: memref<4x8xf32, #tpu.memory_space<smem>>, %arg2: memref<32x128xf32, #tpu.memory_space<vmem>>, %arg3: memref<128x1024xf32, #tpu.memory_space<vmem>>, %arg4: memref<32x128xf32, #tpu.memory_space<vmem>>) attributes {dimension_semantics = [#tpu.dimension_semantics<parallel>], iteration_bounds = array<i64: 2>, scalar_prefetch = 0 : i64, scratch_operands = 0 : i64, tpu.core_type = #tpu.core_type<tc>, window_params = [{transform_indices = @transform_0, window_bounds = array<i64: 4, 8>}, {transform_indices = @transform_1, window_bounds = array<i64: 32, 128>}, {pipeline_mode = #tpu.pipeline_mode<synchronous>, transform_indices = @transform_2, window_bounds = array<i64: 128, 1024>}, {transform_indices = @transform_3, window_bounds = array<i64: 32, 128>}]} {
    %c2_i32 = arith.constant 2 : i32
    %0 = arith.muli %arg0, %c2_i32 : i32
    %c0 = arith.constant 0 : index
    %c0_0 = arith.constant 0 : index
    %1 = vector.load %arg2[%c0, %c0_0] : memref<32x128xf32, #tpu.memory_space<vmem>>, vector<32x128xf32>
    %c0_1 = arith.constant 0 : index
    %c0_2 = arith.constant 0 : index
    %2 = vector.load %arg3[%c0_1, %c0_2] : memref<128x1024xf32, #tpu.memory_space<vmem>>, vector<128x1024xf32>
    %cst = arith.constant dense<0.000000e+00> : vector<32x1024xf32>
    %3 = tpu.matmul %1, %2, %cst {dimension_numbers = #tpu.dot_dimension_numbers<[1], [0], [0], [1], [0, 0, 1, 1], [], []>} : vector<32x128xf32>, vector<128x1024xf32>, vector<32x1024xf32> -> vector<32x1024xf32>
    %4 = vector.extract_strided_slice %3 {offsets = [0, 0], sizes = [16, 1024], strides = [1, 1]} : vector<32x1024xf32> to vector<16x1024xf32>
    %c0_i32 = arith.constant 0 : i32
    %5 = arith.addi %0, %c0_i32 : i32
    %6 = arith.index_cast %5 : i32 to index
    %c0_3 = arith.constant 0 : index
    %7 = memref.load %arg1[%6, %c0_3] : memref<4x8xf32, #tpu.memory_space<smem>>
    %8 = vector.extract_strided_slice %4 {offsets = [0, 0], sizes = [16, 128], strides = [1, 1]} : vector<16x1024xf32> to vector<16x128xf32>
    %9 = vector.broadcast %7 : f32 to vector<16x128xf32>
    %10 = arith.mulf %8, %9 : vector<16x128xf32>
    %c0_i32_4 = arith.constant 0 : i32
    %11 = arith.addi %0, %c0_i32_4 : i32
    %12 = arith.index_cast %11 : i32 to index
    %c1 = arith.constant 1 : index
    %13 = memref.load %arg1[%12, %c1] : memref<4x8xf32, #tpu.memory_space<smem>>
    %14 = vector.extract_strided_slice %4 {offsets = [0, 128], sizes = [16, 128], strides = [1, 1]} : vector<16x1024xf32> to vector<16x128xf32>
    %15 = vector.broadcast %13 : f32 to vector<16x128xf32>
    %16 = arith.mulf %14, %15 : vector<16x128xf32>
    %c0_i32_5 = arith.constant 0 : i32
    %17 = arith.addi %0, %c0_i32_5 : i32
    %18 = arith.index_cast %17 : i32 to index
    %c2 = arith.constant 2 : index
    %19 = memref.load %arg1[%18, %c2] : memref<4x8xf32, #tpu.memory_space<smem>>
    %20 = vector.extract_strided_slice %4 {offsets = [0, 256], sizes = [16, 128], strides = [1, 1]} : vector<16x1024xf32> to vector<16x128xf32>
    %21 = vector.broadcast %19 : f32 to vector<16x128xf32>
    %22 = arith.mulf %20, %21 : vector<16x128xf32>
    %c0_i32_6 = arith.constant 0 : i32
    %23 = arith.addi %0, %c0_i32_6 : i32
    %24 = arith.index_cast %23 : i32 to index
    %c3 = arith.constant 3 : index
    %25 = memref.load %arg1[%24, %c3] : memref<4x8xf32, #tpu.memory_space<smem>>
    %26 = vector.extract_strided_slice %4 {offsets = [0, 384], sizes = [16, 128], strides = [1, 1]} : vector<16x1024xf32> to vector<16x128xf32>
    %27 = vector.broadcast %25 : f32 to vector<16x128xf32>
    %28 = arith.mulf %26, %27 : vector<16x128xf32>
    %c0_i32_7 = arith.constant 0 : i32
    %29 = arith.addi %0, %c0_i32_7 : i32
    %30 = arith.index_cast %29 : i32 to index
    %c4 = arith.constant 4 : index
    %31 = memref.load %arg1[%30, %c4] : memref<4x8xf32, #tpu.memory_space<smem>>
    %32 = vector.extract_strided_slice %4 {offsets = [0, 512], sizes = [16, 128], strides = [1, 1]} : vector<16x1024xf32> to vector<16x128xf32>
    %33 = vector.broadcast %31 : f32 to vector<16x128xf32>
    %34 = arith.mulf %32, %33 : vector<16x128xf32>
    %35 = arith.addf %10, %34 : vector<16x128xf32>
    %c0_i32_8 = arith.constant 0 : i32
    %36 = arith.addi %0, %c0_i32_8 : i32
    %37 = arith.index_cast %36 : i32 to index
    %c5 = arith.constant 5 : index
    %38 = memref.load %arg1[%37, %c5] : memref<4x8xf32, #tpu.memory_space<smem>>
    %39 = vector.extract_strided_slice %4 {offsets = [0, 640], sizes = [16, 128], strides = [1, 1]} : vector<16x1024xf32> to vector<16x128xf32>
    %40 = vector.broadcast %38 : f32 to vector<16x128xf32>
    %41 = arith.mulf %39, %40 : vector<16x128xf32>
    %42 = arith.addf %16, %41 : vector<16x128xf32>
    %c0_i32_9 = arith.constant 0 : i32
    %43 = arith.addi %0, %c0_i32_9 : i32
    %44 = arith.index_cast %43 : i32 to index
    %c6 = arith.constant 6 : index
    %45 = memref.load %arg1[%44, %c6] : memref<4x8xf32, #tpu.memory_space<smem>>
    %46 = vector.extract_strided_slice %4 {offsets = [0, 768], sizes = [16, 128], strides = [1, 1]} : vector<16x1024xf32> to vector<16x128xf32>
    %47 = vector.broadcast %45 : f32 to vector<16x128xf32>
    %48 = arith.mulf %46, %47 : vector<16x128xf32>
    %49 = arith.addf %22, %48 : vector<16x128xf32>
    %c0_i32_10 = arith.constant 0 : i32
    %50 = arith.addi %0, %c0_i32_10 : i32
    %51 = arith.index_cast %50 : i32 to index
    %c7 = arith.constant 7 : index
    %52 = memref.load %arg1[%51, %c7] : memref<4x8xf32, #tpu.memory_space<smem>>
    %53 = vector.extract_strided_slice %4 {offsets = [0, 896], sizes = [16, 128], strides = [1, 1]} : vector<16x1024xf32> to vector<16x128xf32>
    %54 = vector.broadcast %52 : f32 to vector<16x128xf32>
    %55 = arith.mulf %53, %54 : vector<16x128xf32>
    %56 = arith.addf %28, %55 : vector<16x128xf32>
    %57 = arith.addf %35, %42 : vector<16x128xf32>
    %58 = arith.addf %57, %49 : vector<16x128xf32>
    %59 = arith.addf %58, %56 : vector<16x128xf32>
    %c0_11 = arith.constant 0 : index
    %c0_12 = arith.constant 0 : index
    %60 = vector.load %arg4[%c0_11, %c0_12] : memref<32x128xf32, #tpu.memory_space<vmem>>, vector<16x128xf32>
    tpu.vector_store %arg4[%c0_11, %c0_12], %59 {strides = array<i32>} : memref<32x128xf32, #tpu.memory_space<vmem>>, vector<16x128xf32>,
    %61 = vector.extract_strided_slice %3 {offsets = [16, 0], sizes = [16, 1024], strides = [1, 1]} : vector<32x1024xf32> to vector<16x1024xf32>
    %c1_i32 = arith.constant 1 : i32
    %62 = arith.addi %0, %c1_i32 : i32
    %63 = arith.index_cast %62 : i32 to index
    %c0_13 = arith.constant 0 : index
    %64 = memref.load %arg1[%63, %c0_13] : memref<4x8xf32, #tpu.memory_space<smem>>
    %65 = vector.extract_strided_slice %61 {offsets = [0, 0], sizes = [16, 128], strides = [1, 1]} : vector<16x1024xf32> to vector<16x128xf32>
    %66 = vector.broadcast %64 : f32 to vector<16x128xf32>
    %67 = arith.mulf %65, %66 : vector<16x128xf32>
    %c1_i32_14 = arith.constant 1 : i32
    %68 = arith.addi %0, %c1_i32_14 : i32
    %69 = arith.index_cast %68 : i32 to index
    %c1_15 = arith.constant 1 : index
    %70 = memref.load %arg1[%69, %c1_15] : memref<4x8xf32, #tpu.memory_space<smem>>
    %71 = vector.extract_strided_slice %61 {offsets = [0, 128], sizes = [16, 128], strides = [1, 1]} : vector<16x1024xf32> to vector<16x128xf32>
    %72 = vector.broadcast %70 : f32 to vector<16x128xf32>
    %73 = arith.mulf %71, %72 : vector<16x128xf32>
    %c1_i32_16 = arith.constant 1 : i32
    %74 = arith.addi %0, %c1_i32_16 : i32
    %75 = arith.index_cast %74 : i32 to index
    %c2_17 = arith.constant 2 : index
    %76 = memref.load %arg1[%75, %c2_17] : memref<4x8xf32, #tpu.memory_space<smem>>
    %77 = vector.extract_strided_slice %61 {offsets = [0, 256], sizes = [16, 128], strides = [1, 1]} : vector<16x1024xf32> to vector<16x128xf32>
    %78 = vector.broadcast %76 : f32 to vector<16x128xf32>
    %79 = arith.mulf %77, %78 : vector<16x128xf32>
    %c1_i32_18 = arith.constant 1 : i32
    %80 = arith.addi %0, %c1_i32_18 : i32
    %81 = arith.index_cast %80 : i32 to index
    %c3_19 = arith.constant 3 : index
    %82 = memref.load %arg1[%81, %c3_19] : memref<4x8xf32, #tpu.memory_space<smem>>
    %83 = vector.extract_strided_slice %61 {offsets = [0, 384], sizes = [16, 128], strides = [1, 1]} : vector<16x1024xf32> to vector<16x128xf32>
    %84 = vector.broadcast %82 : f32 to vector<16x128xf32>
    %85 = arith.mulf %83, %84 : vector<16x128xf32>
    %c1_i32_20 = arith.constant 1 : i32
    %86 = arith.addi %0, %c1_i32_20 : i32
    %87 = arith.index_cast %86 : i32 to index
    %c4_21 = arith.constant 4 : index
    %88 = memref.load %arg1[%87, %c4_21] : memref<4x8xf32, #tpu.memory_space<smem>>
    %89 = vector.extract_strided_slice %61 {offsets = [0, 512], sizes = [16, 128], strides = [1, 1]} : vector<16x1024xf32> to vector<16x128xf32>
    %90 = vector.broadcast %88 : f32 to vector<16x128xf32>
    %91 = arith.mulf %89, %90 : vector<16x128xf32>
    %92 = arith.addf %67, %91 : vector<16x128xf32>
    %c1_i32_22 = arith.constant 1 : i32
    %93 = arith.addi %0, %c1_i32_22 : i32
    %94 = arith.index_cast %93 : i32 to index
    %c5_23 = arith.constant 5 : index
    %95 = memref.load %arg1[%94, %c5_23] : memref<4x8xf32, #tpu.memory_space<smem>>
    %96 = vector.extract_strided_slice %61 {offsets = [0, 640], sizes = [16, 128], strides = [1, 1]} : vector<16x1024xf32> to vector<16x128xf32>
    %97 = vector.broadcast %95 : f32 to vector<16x128xf32>
    %98 = arith.mulf %96, %97 : vector<16x128xf32>
    %99 = arith.addf %73, %98 : vector<16x128xf32>
    %c1_i32_24 = arith.constant 1 : i32
    %100 = arith.addi %0, %c1_i32_24 : i32
    %101 = arith.index_cast %100 : i32 to index
    %c6_25 = arith.constant 6 : index
    %102 = memref.load %arg1[%101, %c6_25] : memref<4x8xf32, #tpu.memory_space<smem>>
    %103 = vector.extract_strided_slice %61 {offsets = [0, 768], sizes = [16, 128], strides = [1, 1]} : vector<16x1024xf32> to vector<16x128xf32>
    %104 = vector.broadcast %102 : f32 to vector<16x128xf32>
    %105 = arith.mulf %103, %104 : vector<16x128xf32>
    %106 = arith.addf %79, %105 : vector<16x128xf32>
    %c1_i32_26 = arith.constant 1 : i32
    %107 = arith.addi %0, %c1_i32_26 : i32
    %108 = arith.index_cast %107 : i32 to index
    %c7_27 = arith.constant 7 : index
    %109 = memref.load %arg1[%108, %c7_27] : memref<4x8xf32, #tpu.memory_space<smem>>
    %110 = vector.extract_strided_slice %61 {offsets = [0, 896], sizes = [16, 128], strides = [1, 1]} : vector<16x1024xf32> to vector<16x128xf32>
    %111 = vector.broadcast %109 : f32 to vector<16x128xf32>
    %112 = arith.mulf %110, %111 : vector<16x128xf32>
    %113 = arith.addf %85, %112 : vector<16x128xf32>
    %114 = arith.addf %92, %99 : vector<16x128xf32>
    %115 = arith.addf %114, %106 : vector<16x128xf32>
    %116 = arith.addf %115, %113 : vector<16x128xf32>
    %c16 = arith.constant 16 : index
    %c0_28 = arith.constant 0 : index
    %117 = vector.load %arg4[%c16, %c0_28] : memref<32x128xf32, #tpu.memory_space<vmem>>, vector<16x128xf32>
    tpu.vector_store %arg4[%c16, %c0_28], %116 {strides = array<i32>} : memref<32x128xf32, #tpu.memory_space<vmem>>, vector<16x128xf32>,
    return
  }
  func.func @transform_0(%arg0: i32) -> (i32, i32) {
    %c0_i32 = arith.constant 0 : i32
    %c0_i32_0 = arith.constant 0 : i32
    %c0_i32_1 = arith.constant 0 : i32
    return %c0_i32, %c0_i32_0 : i32, i32
  }
  func.func @transform_1(%arg0: i32) -> (i32, i32) {
    %c0_i32 = arith.constant 0 : i32
    %c0_i32_0 = arith.constant 0 : i32
    return %arg0, %c0_i32 : i32, i32
  }
  func.func @transform_2(%arg0: i32) -> (i32, i32) {
    %c0_i32 = arith.constant 0 : i32
    %c0_i32_0 = arith.constant 0 : i32
    %c0_i32_1 = arith.constant 0 : i32
    return %c0_i32, %c0_i32_0 : i32, i32
  }
  func.func @transform_3(%arg0: i32) -> (i32, i32) {
    %c0_i32 = arith.constant 0 : i32
    %c0_i32_0 = arith.constant 0 : i32
    return %arg0, %c0_i32 : i32, i32
  }
}

</mosaic_0001>

<bundles_post_ra>
// kernel: critic_forward.1
= control target key start
LH: loop header
LB: loop body
LE: loop exit
PB: predicated region body
PF: predicated region fallthrough
CT: control target
= control target key end

     0   :  { %8 = vsyncpa [#allocation4], 0  ;;  %s1100_s0 = inlined_call_operand.vmem [shape: f32[4,8], index: 0, kind: input, shape index: {}]   ;;  %s1101_s1 = inlined_call_operand.vmem [shape: f32[64,128], index: 1, kind: input, shape index: {}]   ;;  %s1102_s2 = inlined_call_operand.hbm [shape: f32[128,1024], index: 2, kind: input, shape index: {}]   ;;  %s1103_s3 = inlined_call_operand.vmem [shape: f32[64,128], index: 3, kind: output, shape index: {}]  }
   0x1   :  { %9 = vsyncpa [#allocation3], 0  ;;  %s901_s12 = smov 0  }
   0x2 LB: > { %s126_s15 = sshll.u32 %s1100_s0, 4  ;;  %s910_s16 = sadd.s32 4294967295, %s875_s12   ;;  %s875_s12 = sphi %s901_s12, %s15_s12   ;;  %s127_s15 = int_to_ptr.vmem [resolvable:$true] %s126_s15 }
   0x3   : > { %p765_p0 = scmp.ge.s32.totalorder %s875_s12, 1  ;;  %p114_p1 = scmp.lt.s32.totalorder %s875_s12, 3 }
   0x4   : > { %p800_p2 = scmp.eq.s32.totalorder %s910_s16, 0  ;;  %s135_s20 = sshll.u32 %s1102_s2, 4  ;;  %s136_s20 = int_to_ptr.hbm [resolvable:$true] %s135_s20 }
   0x5   : > { %p915_p3 = pnand %p765_p0, %p114_p1  ;;  %s877_s21 = smov [#allocation5]  }
   0x6   : > { %s137_s22 = sshll.u32 %s877_s21, 4  ;;  %s878_s23 = smov [#allocation2]   ;;  %s138_s22 = int_to_ptr.vmem [resolvable:$true] %s137_s22 }
   0x7   : > { %p793_p4 = pneg %p915_p3  ;;  %s879_s24 = smov 1024  }
   0x8   : > { %s880_s25 = smov 64   ;;  %162 = sbr.rel (%p915_p3) target bundleno = 257 (0x101), region = 32 }
   0x9   : > { %p794_p5 = pnand %p800_p2, %p793_p4 }
   0xb   : > { %796 = dma.vmem_to_smem (!%p794_p5), %s127_s15, 64, %s878_s23, [#allocation4]  }
   0xc   : > { %799 = dma.hbm_to_vmem [thread:$0]  (!%p794_p5), %s136_s20, 16384, %s138_s22, [#allocation3], %s879_s24, %s879_s24, %s880_s25  }
   0xd   : > { %866 = dma.done.wait (%p800_p2), [#allocation4], 64  }
   0xe   : > { %868 = vsyncadd (%p800_p2), [#allocation4], 4294967232 }
   0xf   : > { %870 = dma.done.wait (%p800_p2), [#allocation3], 16384  }
  0x10   : > { %872 = vsyncadd (%p800_p2), [#allocation3], 4294950912 }
  0x11   : > { %174 = sfence }
  0x12   : > { %v330_v0 = vld [vmem:[#allocation5 + $0x3c0] sm:$0xff]  ;;  %v331_v1 = vld [vmem:[#allocation5 + $0x3c8] sm:$0xff]  ;;  %v332_v2 = vld [vmem:[#allocation5 + $0x3d0] sm:$0xff]  ;;  %s772_s26 = sshll.u32 %s910_s16, 2  ;;  %s781_s5 = sshll.u32 %s910_s16, 8 }
  0x13   : > { %338 = vmatpush.msra.mxu0 %v330_v0  ;;  %367 = vmatpush.msra.mxu1 %v331_v1  ;;  %v333_v3 = vld [vmem:[#allocation5 + $0x3d8] sm:$0xff]  ;;  %v322_v4 = vld [vmem:[#allocation5 + $0x380] sm:$0xff]  ;;  %v323_v5 = vld [vmem:[#allocation5 + $0x388] sm:$0xff]  ;;  %p939_p6 = scmp.lt.s32.totalorder %s772_s26, 7  ;;  %s590_s6 = sadd.s32 4, %s781_s5 }
  0x14   : > { %396 = vmatpush.msra.mxu2 %v332_v2  ;;  %425 = vmatpush.msra.mxu3 %v333_v3  ;;  %v324_v6 = vld [vmem:[#allocation5 + $0x390] sm:$0xff]  ;;  %v325_v7 = vld [vmem:[#allocation5 + $0x398] sm:$0xff]  ;;  %v314_v8 = vld [vmem:[#allocation5 + $0x340] sm:$0xff]  ;;  %s597_s7 = sadd.s32 5, %s781_s5  ;;  %s575_s8 = sadd.s32 1, %s781_s5 }
  0x15   : > { %339 = vmatpush.msra.mxu0 %v322_v4  ;;  %368 = vmatpush.msra.mxu1 %v323_v5  ;;  %v315_v9 = vld [vmem:[#allocation5 + $0x348] sm:$0xff]  ;;  %v316_v10 = vld [vmem:[#allocation5 + $0x350] sm:$0xff]  ;;  %v317_v11 = vld [vmem:[#allocation5 + $0x358] sm:$0xff]  ;;  %s1107_s26 = smov (!%p939_p6, %s772_s26), 7  ;;  %s1012_s9 = sld [smem:[#allocation2 + %s590_s6]] }
  0x16   : > { %397 = vmatpush.msra.mxu2 %v324_v6  ;;  %426 = vmatpush.msra.mxu3 %v325_v7  ;;  %v306_v12 = vld [vmem:[#allocation5 + $0x300] sm:$0xff]  ;;  %v307_v13 = vld [vmem:[#allocation5 + $0x308] sm:$0xff]  ;;  %v308_v14 = vld [vmem:[#allocation5 + $0x310] sm:$0xff]  ;;  %s773_s28 = sshll.u32 %s1107_s26, 3  ;;  %s1014_s10 = sld [smem:[#allocation2 + %s597_s7]] }
  0x17   : > { %340 = vmatpush.msra.mxu0 %v314_v8  ;;  %369 = vmatpush.msra.mxu1 %v315_v9  ;;  %v309_v15 = vld [vmem:[#allocation5 + $0x318] sm:$0xff]  ;;  %v298_v16 = vld [vmem:[#allocation5 + $0x2c0] sm:$0xff]  ;;  %v299_v17 = vld [vmem:[#allocation5 + $0x2c8] sm:$0xff]  ;;  %s955_s4 = scalar_lea.vmem %s1101_s1, %s773_s28  ;;  %s1016_s11 = sld [smem:[#allocation2 + %s781_s5]] }
  0x18   : > { %398 = vmatpush.msra.mxu2 %v316_v10  ;;  %427 = vmatpush.msra.mxu3 %v317_v11  ;;  %v300_v18 = vld [vmem:[#allocation5 + $0x2d0] sm:$0xff]  ;;  %v301_v19 = vld [vmem:[#allocation5 + $0x2d8] sm:$0xff]  ;;  %v290_v20 = vld [vmem:[#allocation5 + $0x280] sm:$0xff]  ;;  %s580_s13 = sadd.s32 2, %s781_s5  ;;  %s1018_s14 = sld [smem:[#allocation2 + %s575_s8]] }
  0x19   : > { %341 = vmatpush.msra.mxu0 %v306_v12  ;;  %370 = vmatpush.msra.mxu1 %v307_v13  ;;  %v291_v21 = vld [vmem:[#allocation5 + $0x288] sm:$0xff]  ;;  %v292_v22 = vld [vmem:[#allocation5 + $0x290] sm:$0xff]  ;;  %v293_v23 = vld [vmem:[#allocation5 + $0x298] sm:$0xff]  ;;  %s604_s15 = sadd.s32 6, %s781_s5  ;;  %s611_s16 = sadd.s32 7, %s781_s5 }
  0x1a   : > { %399 = vmatpush.msra.mxu2 %v308_v14  ;;  %428 = vmatpush.msra.mxu3 %v309_v15  ;;  %v282_v24 = vld [vmem:[#allocation5 + $0x240] sm:$0xff]  ;;  %v283_v25 = vld [vmem:[#allocation5 + $0x248] sm:$0xff]  ;;  %v284_v26 = vld [vmem:[#allocation5 + $0x250] sm:$0xff]  ;;  %s1020_s17 = sld [smem:[#allocation2 + %s580_s13]]  ;;  %s585_s18 = sadd.s32 3, %s781_s5 }
  0x1b   : > { %342 = vmatpush.msra.mxu0 %v298_v16  ;;  %371 = vmatpush.msra.mxu1 %v299_v17  ;;  %v285_v27 = vld [vmem:[#allocation5 + $0x258] sm:$0xff]  ;;  %v274_v28 = vld [vmem:[#allocation5 + $0x200] sm:$0xff]  ;;  %v275_v29 = vld [vmem:[#allocation5 + $0x208] sm:$0xff]  ;;  %s1022_s19 = sld [smem:[#allocation2 + %s604_s15]]  ;;  %s1036_s22 = sadd.s32 128, %s781_s5 }
  0x1c   : > { %400 = vmatpush.msra.mxu2 %v300_v18  ;;  %429 = vmatpush.msra.mxu3 %v301_v19  ;;  %v276_v30 = vld [vmem:[#allocation5 + $0x210] sm:$0xff]  ;;  %v277_v31 = vld [vmem:[#allocation5 + $0x218] sm:$0xff]  ;;  %v266_v32 = vld [vmem:[#allocation5 + $0x1c0] sm:$0xff]  ;;  %s1028_s20 = sld [smem:[#allocation2 + %s611_s16]]  ;;  %s647_s23 = sadd.s32 4, %s1036_s22 }
  0x1d   : > { %343 = vmatpush.msra.mxu0 %v290_v20  ;;  %372 = vmatpush.msra.mxu1 %v291_v21  ;;  %v267_v33 = vld [vmem:[#allocation5 + $0x1c8] sm:$0xff]  ;;  %v268_v34 = vld [vmem:[#allocation5 + $0x1d0] sm:$0xff]  ;;  %v269_v35 = vld [vmem:[#allocation5 + $0x1d8] sm:$0xff]  ;;  %s1030_s21 = sld [smem:[#allocation2 + %s585_s18]]  ;;  %s654_s24 = sadd.s32 5, %s1036_s22 }
  0x1e   : > { %401 = vmatpush.msra.mxu2 %v292_v22  ;;  %430 = vmatpush.msra.mxu3 %v293_v23  ;;  %v258_v36 = vld [vmem:[#allocation5 + $0x180] sm:$0xff]  ;;  %v259_v37 = vld [vmem:[#allocation5 + $0x188] sm:$0xff]  ;;  %v260_v38 = vld [vmem:[#allocation5 + $0x190] sm:$0xff]  ;;  %s632_s25 = sadd.s32 1, %s1036_s22  ;;  %s1045_s27 = sld [smem:[#allocation2 + %s647_s23]] }
  0x1f   : > { %344 = vmatpush.msra.mxu0 %v282_v24  ;;  %373 = vmatpush.msra.mxu1 %v283_v25  ;;  %v261_v39 = vld [vmem:[#allocation5 + $0x198] sm:$0xff]  ;;  %v250_v40 = vld [vmem:[#allocation5 + $0x140] sm:$0xff]  ;;  %v251_v41 = vld [vmem:[#allocation5 + $0x148] sm:$0xff]  ;;  %s1047_s29 = sld [smem:[#allocation2 + %s654_s24]]  ;;  %s661_s6 = sadd.s32 6, %s1036_s22 }
  0x20   : > { %402 = vmatpush.msra.mxu2 %v284_v26  ;;  %431 = vmatpush.msra.mxu3 %v285_v27  ;;  %v252_v42 = vld [vmem:[#allocation5 + $0x150] sm:$0xff]  ;;  %v253_v43 = vld [vmem:[#allocation5 + $0x158] sm:$0xff]  ;;  %v242_v44 = vld [vmem:[#allocation5 + $0x100] sm:$0xff]  ;;  %s1050_s30 = sld [smem:[#allocation2 + %s1036_s22]]  ;;  %s668_s7 = sadd.s32 7, %s1036_s22 }
  0x21   : > { %345 = vmatpush.msra.mxu0 %v274_v28  ;;  %374 = vmatpush.msra.mxu1 %v275_v29  ;;  %v243_v45 = vld [vmem:[#allocation5 + $0x108] sm:$0xff]  ;;  %v244_v46 = vld [vmem:[#allocation5 + $0x110] sm:$0xff]  ;;  %v245_v47 = vld [vmem:[#allocation5 + $0x118] sm:$0xff]  ;;  %s1053_s5 = sld [smem:[#allocation2 + %s632_s25]] }
  0x22   : > { %403 = vmatpush.msra.mxu2 %v276_v30  ;;  %432 = vmatpush.msra.mxu3 %v277_v31  ;;  %v234_v48 = vld [vmem:[#allocation5 + $0xc0] sm:$0xff]  ;;  %v235_v49 = vld [vmem:[#allocation5 + $0xc8] sm:$0xff]  ;;  %v236_v50 = vld [vmem:[#allocation5 + $0xd0] sm:$0xff]  ;;  %s1071_s15 = sld [smem:[#allocation2 + %s668_s7]] }
  0x23   : > { %346 = vmatpush.msra.mxu0 %v266_v32  ;;  %375 = vmatpush.msra.mxu1 %v267_v33  ;;  %v237_v51 = vld [vmem:[#allocation5 + $0xd8] sm:$0xff]  ;;  %v226_v52 = vld [vmem:[#allocation5 + $0x80] sm:$0xff]  ;;  %v227_v53 = vld [vmem:[#allocation5 + $0x88] sm:$0xff] }
  0x24   : > { %404 = vmatpush.msra.mxu2 %v268_v34  ;;  %433 = vmatpush.msra.mxu3 %v269_v35  ;;  %v228_v54 = vld [vmem:[#allocation5 + $0x90] sm:$0xff]  ;;  %v229_v55 = vld [vmem:[#allocation5 + $0x98] sm:$0xff]  ;;  %v218_v56 = vld [vmem:[#allocation5 + $0x40] sm:$0xff] }
  0x25   : > { %347 = vmatpush.msra.mxu0 %v258_v36  ;;  %376 = vmatpush.msra.mxu1 %v259_v37  ;;  %v219_v57 = vld [vmem:[#allocation5 + $0x48] sm:$0xff]  ;;  %v220_v58 = vld [vmem:[#allocation5 + $0x50] sm:$0xff]  ;;  %v221_v59 = vld [vmem:[#allocation5 + $0x58] sm:$0xff] }
  0x26   : > { %405 = vmatpush.msra.mxu2 %v260_v38  ;;  %434 = vmatpush.msra.mxu3 %v261_v39  ;;  %v210_v60 = vld [vmem:[#allocation5] sm:$0xff]  ;;  %v211_v61 = vld [vmem:[#allocation5 + $0x8] sm:$0xff]  ;;  %v212_v62 = vld [vmem:[#allocation5 + $0x10] sm:$0xff] }
  0x27   : > { %348 = vmatpush.msra.mxu0 %v250_v40  ;;  %377 = vmatpush.msra.mxu1 %v251_v41  ;;  %v213_v63 = vld [vmem:[#allocation5 + $0x18] sm:$0xff]  ;;  %v958_v0 = vld [vmem:[%s955_s4] sm:$0xff]  ;;  %v336_v1 = vld [vmem:[#allocation5 + $0x3f0] sm:$0xff] }
  0x28   : > { %406 = vmatpush.msra.mxu2 %v252_v42  ;;  %435 = vmatpush.msra.mxu3 %v253_v43  ;;  %v334_v2 = vld [vmem:[#allocation5 + $0x3e0] sm:$0xff]  ;;  %v335_v3 = vld [vmem:[#allocation5 + $0x3e8] sm:$0xff]  ;;  %v337_v4 = vld [vmem:[#allocation5 + $0x3f8] sm:$0xff] }
  0x29   : > { %349 = vmatpush.msra.mxu0 %v242_v44  ;;  %378 = vmatpush.msra.mxu1 %v243_v45  ;;  %v328_v5 = vld [vmem:[#allocation5 + $0x3b0] sm:$0xff]  ;;  %v326_v6 = vld [vmem:[#allocation5 + $0x3a0] sm:$0xff]  ;;  %v327_v7 = vld [vmem:[#allocation5 + $0x3a8] sm:$0xff] }
  0x2a   : > { %407 = vmatpush.msra.mxu2 %v244_v46  ;;  %436 = vmatpush.msra.mxu3 %v245_v47  ;;  %v329_v8 = vld [vmem:[#allocation5 + $0x3b8] sm:$0xff]  ;;  %v320_v9 = vld [vmem:[#allocation5 + $0x370] sm:$0xff]  ;;  %v318_v10 = vld [vmem:[#allocation5 + $0x360] sm:$0xff] }
  0x2b   : > { %350 = vmatpush.msra.mxu0 %v234_v48  ;;  %379 = vmatpush.msra.mxu1 %v235_v49  ;;  %v319_v11 = vld [vmem:[#allocation5 + $0x368] sm:$0xff]  ;;  %v321_v12 = vld [vmem:[#allocation5 + $0x378] sm:$0xff]  ;;  %v312_v13 = vld [vmem:[#allocation5 + $0x330] sm:$0xff] }
  0x2c   : > { %408 = vmatpush.msra.mxu2 %v236_v50  ;;  %437 = vmatpush.msra.mxu3 %v237_v51  ;;  %v310_v14 = vld [vmem:[#allocation5 + $0x320] sm:$0xff]  ;;  %v311_v15 = vld [vmem:[#allocation5 + $0x328] sm:$0xff]  ;;  %v313_v16 = vld [vmem:[#allocation5 + $0x338] sm:$0xff] }
  0x2d   : > { %351 = vmatpush.msra.mxu0 %v226_v52  ;;  %380 = vmatpush.msra.mxu1 %v227_v53  ;;  %v965_v17 = vld [vmem:[%s955_s4 + $0x8] sm:$0xff]  ;;  %v304_v18 = vld [vmem:[#allocation5 + $0x2f0] sm:$0xff]  ;;  %v302_v19 = vld [vmem:[#allocation5 + $0x2e0] sm:$0xff] }
  0x2e   : > { %409 = vmatpush.msra.mxu2 %v228_v54  ;;  %438 = vmatpush.msra.mxu3 %v229_v55  ;;  %v303_v20 = vld [vmem:[#allocation5 + $0x2e8] sm:$0xff]  ;;  %v305_v21 = vld [vmem:[#allocation5 + $0x2f8] sm:$0xff]  ;;  %v296_v22 = vld [vmem:[#allocation5 + $0x2b0] sm:$0xff] }
  0x2f   : > { %352 = vmatpush.msra.mxu0 %v218_v56  ;;  %381 = vmatpush.msra.mxu1 %v219_v57  ;;  %v294_v23 = vld [vmem:[#allocation5 + $0x2a0] sm:$0xff]  ;;  %v295_v24 = vld [vmem:[#allocation5 + $0x2a8] sm:$0xff]  ;;  %v297_v25 = vld [vmem:[#allocation5 + $0x2b8] sm:$0xff] }
  0x30   : > { %410 = vmatpush.msra.mxu2 %v220_v58  ;;  %439 = vmatpush.msra.mxu3 %v221_v59  ;;  %v288_v26 = vld [vmem:[#allocation5 + $0x270] sm:$0xff]  ;;  %v286_v27 = vld [vmem:[#allocation5 + $0x260] sm:$0xff]  ;;  %v287_v28 = vld [vmem:[#allocation5 + $0x268] sm:$0xff] }
  0x31   : > { %353 = vmatpush.msra.mxu0 %v210_v60  ;;  %382 = vmatpush.msra.mxu1 %v211_v61  ;;  %v289_v29 = vld [vmem:[#allocation5 + $0x278] sm:$0xff]  ;;  %v280_v30 = vld [vmem:[#allocation5 + $0x230] sm:$0xff]  ;;  %v278_v31 = vld [vmem:[#allocation5 + $0x220] sm:$0xff] }
  0x32   : > { %411 = vmatpush.msra.mxu2 %v212_v62  ;;  %440 = vmatpush.msra.mxu3 %v213_v63  ;;  %v279_v32 = vld [vmem:[#allocation5 + $0x228] sm:$0xff]  ;;  %v281_v33 = vld [vmem:[#allocation5 + $0x238] sm:$0xff]  ;;  %v972_v34 = vld [vmem:[%s955_s4 + $0x10] sm:$0xff] }
  0x33   : > { %354 = vmatmul.f32.vlgmr.msra.gmra.mxu0 %v958_v0  ;;  %383 = vmatmul.f32.vlgmr.msra.gmra.mxu1 %v958_v0  ;;  %v272_v35 = vld [vmem:[#allocation5 + $0x1f0] sm:$0xff]  ;;  %v270_v36 = vld [vmem:[#allocation5 + $0x1e0] sm:$0xff]  ;;  %v271_v37 = vld [vmem:[#allocation5 + $0x1e8] sm:$0xff] }
  0x34   : > { %412 = vmatmul.f32.vlgmr.msra.gmra.mxu2 %v958_v0  ;;  %441 = vmatmul.f32.vlgmr.msra.gmra.mxu3 %v958_v0  ;;  %v273_v38 = vld [vmem:[#allocation5 + $0x1f8] sm:$0xff]  ;;  %v264_v39 = vld [vmem:[#allocation5 + $0x1b0] sm:$0xff]  ;;  %v262_v40 = vld [vmem:[#allocation5 + $0x1a0] sm:$0xff] }
  0x35   : > { %512 = vmatpush.msrb.mxu2 %v336_v1  ;;  %454 = vmatpush.msrb.mxu0 %v334_v2  ;;  %v263_v41 = vld [vmem:[#allocation5 + $0x1a8] sm:$0xff]  ;;  %v265_v42 = vld [vmem:[#allocation5 + $0x1b8] sm:$0xff]  ;;  %v256_v43 = vld [vmem:[#allocation5 + $0x170] sm:$0xff] }
  0x36   : > { %483 = vmatpush.msrb.mxu1 %v335_v3  ;;  %541 = vmatpush.msrb.mxu3 %v337_v4  ;;  %v254_v44 = vld [vmem:[#allocation5 + $0x160] sm:$0xff]  ;;  %v255_v45 = vld [vmem:[#allocation5 + $0x168] sm:$0xff]  ;;  %v257_v46 = vld [vmem:[#allocation5 + $0x178] sm:$0xff] }
  0x37   : > { %513 = vmatpush.msrb.mxu2 %v328_v5  ;;  %455 = vmatpush.msrb.mxu0 %v326_v6  ;;  %v248_v47 = vld [vmem:[#allocation5 + $0x130] sm:$0xff]  ;;  %v246_v48 = vld [vmem:[#allocation5 + $0x120] sm:$0xff]  ;;  %v247_v49 = vld [vmem:[#allocation5 + $0x128] sm:$0xff] }
  0x38   : > { %484 = vmatpush.msrb.mxu1 %v327_v7  ;;  %542 = vmatpush.msrb.mxu3 %v329_v8  ;;  %v249_v50 = vld [vmem:[#allocation5 + $0x138] sm:$0xff]  ;;  %v240_v52 = vld [vmem:[#allocation5 + $0xf0] sm:$0xff]  ;;  %v238_v53 = vld [vmem:[#allocation5 + $0xe0] sm:$0xff] }
  0x39   : > { %514 = vmatpush.msrb.mxu2 %v320_v9  ;;  %456 = vmatpush.msrb.mxu0 %v318_v10  ;;  %v209_v51 = vld [vmem:[%s955_s4 + $0x18] sm:$0xff]  ;;  %v239_v54 = vld [vmem:[#allocation5 + $0xe8] sm:$0xff]  ;;  %v232_v56 = vld [vmem:[#allocation5 + $0xb0] sm:$0xff]  ;;  %s637_s4 = sadd.s32 2, %s1036_s22 }
  0x3a   : > { %485 = vmatpush.msrb.mxu1 %v319_v11  ;;  %543 = vmatpush.msrb.mxu3 %v321_v12  ;;  %v241_v55 = vld [vmem:[#allocation5 + $0xf8] sm:$0xff]  ;;  %v230_v57 = vld [vmem:[#allocation5 + $0xa0] sm:$0xff]  ;;  %v231_v58 = vld [vmem:[#allocation5 + $0xa8] sm:$0xff]  ;;  %s1057_s8 = sld [smem:[#allocation2 + %s637_s4]] }
  0x3b   : > { %515 = vmatpush.msrb.mxu2 %v312_v13  ;;  %457 = vmatpush.msrb.mxu0 %v310_v14  ;;  %v233_v59 = vld [vmem:[#allocation5 + $0xb8] sm:$0xff]  ;;  %v224_v60 = vld [vmem:[#allocation5 + $0x70] sm:$0xff]  ;;  %v222_v61 = vld [vmem:[#allocation5 + $0x60] sm:$0xff] }
  0x3c   : > { %486 = vmatpush.msrb.mxu1 %v311_v15  ;;  %544 = vmatpush.msrb.mxu3 %v313_v16  ;;  %v223_v62 = vld [vmem:[#allocation5 + $0x68] sm:$0xff]  ;;  %v225_v63 = vld [vmem:[#allocation5 + $0x78] sm:$0xff]  ;;  %v216_v1 = vld [vmem:[#allocation5 + $0x30] sm:$0xff] }
  0x3d   : > { %357 = vmatmul.f32.gmra.mxu0 %v965_v17  ;;  %386 = vmatmul.f32.gmra.mxu1 %v965_v17  ;;  %v214_v2 = vld [vmem:[#allocation5 + $0x20] sm:$0xff]  ;;  %v215_v3 = vld [vmem:[#allocation5 + $0x28] sm:$0xff]  ;;  %v217_v4 = vld [vmem:[#allocation5 + $0x38] sm:$0xff] }
  0x3e   : > { %415 = vmatmul.f32.gmra.mxu2 %v965_v17  ;;  %444 = vmatmul.f32.gmra.mxu3 %v965_v17 }
  0x3f   : > { %516 = vmatpush.msrb.mxu2 %v304_v18  ;;  %458 = vmatpush.msrb.mxu0 %v302_v19 }
  0x40   : > { %487 = vmatpush.msrb.mxu1 %v303_v20  ;;  %545 = vmatpush.msrb.mxu3 %v305_v21  ;;  %v592_v20 = vstv %s1012_s9  ;;  %v599_v21 = vstv %s1014_s10  ;;  %s642_s9 = sadd.s32 3, %s1036_s22  ;;  %s1062_s10 = sld [smem:[#allocation2 + %s661_s6]] }
  0x41   : > { %517 = vmatpush.msrb.mxu2 %v296_v22  ;;  %459 = vmatpush.msrb.mxu0 %v294_v23  ;;  %s1073_s16 = sld [smem:[#allocation2 + %s642_s9]] }
  0x42   : > { %488 = vmatpush.msrb.mxu1 %v295_v24  ;;  %546 = vmatpush.msrb.mxu3 %v297_v25  ;;  %v572_v24 = vstv %s1016_s11  ;;  %v577_v25 = vstv %s1018_s14  ;;  %s1069_s14 = scalar_lea.vmem %s1103_s3, %s773_s28 }
  0x43   : > { %518 = vmatpush.msrb.mxu2 %v288_v26  ;;  %460 = vmatpush.msrb.mxu0 %v286_v27 }
  0x44   : > { %489 = vmatpush.msrb.mxu1 %v287_v28  ;;  %547 = vmatpush.msrb.mxu3 %v289_v29 }
  0x45   : > { %519 = vmatpush.msrb.mxu2 %v280_v30  ;;  %461 = vmatpush.msrb.mxu0 %v278_v31  ;;  %v582_v30 = vstv %s1020_s17  ;;  %v606_v31 = vstv %s1022_s19 }
  0x46   : > { %490 = vmatpush.msrb.mxu1 %v279_v32  ;;  %548 = vmatpush.msrb.mxu3 %v281_v33  ;;  %v613_v32 = vstv %s1028_s20  ;;  %v587_v33 = vstv %s1030_s21 }
  0x47   : > { %360 = vmatmul.f32.gmra.mxu0 %v972_v34  ;;  %389 = vmatmul.f32.gmra.mxu1 %v972_v34 }
  0x48   : > { %418 = vmatmul.f32.gmra.mxu2 %v972_v34  ;;  %447 = vmatmul.f32.gmra.mxu3 %v972_v34 }
  0x49   : > { %520 = vmatpush.msrb.mxu2 %v272_v35  ;;  %462 = vmatpush.msrb.mxu0 %v270_v36 }
  0x4a   : > { %491 = vmatpush.msrb.mxu1 %v271_v37  ;;  %549 = vmatpush.msrb.mxu3 %v273_v38 }
  0x4b   : > { %521 = vmatpush.msrb.mxu2 %v264_v39  ;;  %463 = vmatpush.msrb.mxu0 %v262_v40 }
  0x4c   : > { %492 = vmatpush.msrb.mxu1 %v263_v41  ;;  %550 = vmatpush.msrb.mxu3 %v265_v42 }
  0x4d   : > { %522 = vmatpush.msrb.mxu2 %v256_v43  ;;  %464 = vmatpush.msrb.mxu0 %v254_v44 }
  0x4e   : > { %493 = vmatpush.msrb.mxu1 %v255_v45  ;;  %551 = vmatpush.msrb.mxu3 %v257_v46 }
  0x4f   : > { %523 = vmatpush.msrb.mxu2 %v248_v47  ;;  %465 = vmatpush.msrb.mxu0 %v246_v48 }
  0x50   : > { %494 = vmatpush.msrb.mxu1 %v247_v49  ;;  %552 = vmatpush.msrb.mxu3 %v249_v50 }
  0x51   : > { %363 = vmatmul.f32.gmra.mxu0 %v209_v51  ;;  %392 = vmatmul.f32.gmra.mxu1 %v209_v51 }
  0x52   : > { %421 = vmatmul.f32.gmra.mxu2 %v209_v51  ;;  %450 = vmatmul.f32.gmra.mxu3 %v209_v51 }
  0x53   : > { %524 = vmatpush.msrb.mxu2 %v240_v52  ;;  %466 = vmatpush.msrb.mxu0 %v238_v53 }
  0x54   : > { %495 = vmatpush.msrb.mxu1 %v239_v54  ;;  %553 = vmatpush.msrb.mxu3 %v241_v55 }
  0x55   : > { %525 = vmatpush.msrb.mxu2 %v232_v56  ;;  %467 = vmatpush.msrb.mxu0 %v230_v57  ;;  %v649_v57 = vstv %s1045_s27 }
  0x56   : > { %496 = vmatpush.msrb.mxu1 %v231_v58  ;;  %554 = vmatpush.msrb.mxu3 %v233_v59  ;;  %v656_v58 = vstv %s1047_s29 }
  0x57   : > { %526 = vmatpush.msrb.mxu2 %v224_v60  ;;  %468 = vmatpush.msrb.mxu0 %v222_v61 }
  0x58   : > { %497 = vmatpush.msrb.mxu1 %v223_v62  ;;  %555 = vmatpush.msrb.mxu3 %v225_v63 }
  0x59   : > { %527 = vmatpush.msrb.mxu2 %v216_v1  ;;  %469 = vmatpush.msrb.mxu0 %v214_v2  ;;  %v629_v2 = vstv %s1050_s30 }
  0x5a   : > { %498 = vmatpush.msrb.mxu1 %v215_v3  ;;  %556 = vmatpush.msrb.mxu3 %v217_v4  ;;  %v634_v3 = vstv %s1053_s5 }
  0x5b   : > { %470 = vmatmul.f32.vlgmr.msrb.gmra.mxu0 %v958_v0  ;;  %499 = vmatmul.f32.vlgmr.msrb.gmra.mxu1 %v958_v0 }
  0x5c   : > { %528 = vmatmul.f32.vlgmr.msrb.gmra.mxu2 %v958_v0  ;;  %557 = vmatmul.f32.vlgmr.msrb.gmra.mxu3 %v958_v0 }
  0x63   : > { %473 = vmatmul.f32.gmra.mxu0 %v965_v17  ;;  %502 = vmatmul.f32.gmra.mxu1 %v965_v17 }
  0x64   : > { %531 = vmatmul.f32.gmra.mxu2 %v965_v17  ;;  %560 = vmatmul.f32.gmra.mxu3 %v965_v17 }
  0x6b   : > { %476 = vmatmul.f32.gmra.mxu0 %v972_v34  ;;  %505 = vmatmul.f32.gmra.mxu1 %v972_v34 }
  0x6c   : > { %534 = vmatmul.f32.gmra.mxu2 %v972_v34  ;;  %563 = vmatmul.f32.gmra.mxu3 %v972_v34 }
  0x73   : > { %479 = vmatmul.f32.gmra.mxu0 %v209_v51  ;;  %508 = vmatmul.f32.gmra.mxu1 %v209_v51 }
  0x74   : > { %537 = vmatmul.f32.gmra.mxu2 %v209_v51  ;;  %566 = vmatmul.f32.gmra.mxu3 %v209_v51 }
  0xb0   : > { %v355_v0 = vpop.f32.mrf.mxu0  ;;  %v384_v5 = vpop.f32.mrf.mxu1 }
  0xb1   : > { %v573_v28 = vmul.f32 %v572_v24, %v355_v0  ;;  %v578_v29 = vmul.f32 %v577_v25, %v384_v5 }
  0xb7   : > { %v413_v6 = vpop.f32.mrf.mxu2  ;;  %v442_v7 = vpop.f32.mrf.mxu3 }
  0xb8   : > { %v583_v38 = vmul.f32 %v582_v30, %v413_v6  ;;  %v588_v43 = vmul.f32 %v587_v33, %v442_v7 }
  0xba   : > { %v991_v8 = vpop.f32.mrf.mxu0  ;;  %v993_v9 = vpop.f32.mrf.mxu1 }
  0xbb   : > { %v574_v48 = vmul.f32 %v572_v24, %v991_v8  ;;  %v579_v49 = vmul.f32 %v577_v25, %v993_v9 }
  0xc1   : > { %v995_v10 = vpop.f32.mrf.mxu2  ;;  %v997_v11 = vpop.f32.mrf.mxu3 }
  0xc2   : > { %v584_v59 = vmul.f32 %v582_v30, %v995_v10  ;;  %v589_v1 = vmul.f32 %v587_v33, %v997_v11 }
  0xc4   : > { %v999_v12 = vpop.f32.mrf.mxu0  ;;  %v1001_v13 = vpop.f32.mrf.mxu1 }
  0xc5   : > { %v630_v7 = vmul.f32 %v629_v2, %v999_v12  ;;  %v635_v8 = vmul.f32 %v634_v3, %v1001_v13 }
  0xcb   : > { %v1004_v14 = vpop.f32.mrf.mxu2  ;;  %v1006_v15 = vpop.f32.mrf.mxu3 }
  0xce   : > { %v1008_v16 = vpop.f32.mrf.mxu0  ;;  %v1010_v17 = vpop.f32.mrf.mxu1 }
  0xd5   : > { %v1024_v18 = vpop.f32.mrf.mxu2  ;;  %v1026_v19 = vpop.f32.mrf.mxu3 }
  0xd8   : > { %v471_v22 = vpop.f32.mrf.mxu0  ;;  %v500_v23 = vpop.f32.mrf.mxu1 }
  0xd9   : > { %v593_v26 = vmul.f32 %v592_v20, %v471_v22  ;;  %v600_v27 = vmul.f32 %v599_v21, %v500_v23  ;;  %v670_v22 = vstv %s1071_s15  ;;  %v644_v23 = vstv %s1073_s16 }
  0xda   : > { %v645_v13 = vmul.f32 %v644_v23, %v1006_v15 }
  0xdb   : > { %v595_v34 = vadd.f32 %v593_v26, %v573_v28  ;;  %v602_v35 = vadd.f32 %v600_v27, %v578_v29 }
  0xdd   : > { %v618_v44 = vadd.f32 %v602_v35, %v595_v34 }
  0xdf   : > { %v529_v36 = vpop.f32.mrf.mxu2  ;;  %v558_v37 = vpop.f32.mrf.mxu3 }
  0xe0   : > { %v607_v39 = vmul.f32 %v606_v31, %v529_v36  ;;  %v614_v40 = vmul.f32 %v613_v32, %v558_v37  ;;  %v474_v41 = vpop.f32.mrf.mxu0  ;;  %v503_v42 = vpop.f32.mrf.mxu1  ;;  %v631_v36 = vmul.f32 %v629_v2, %v1008_v16  ;;  %v636_v37 = vmul.f32 %v634_v3, %v1010_v17 }
  0xe1   : > { %v594_v46 = vmul.f32 %v592_v20, %v474_v41  ;;  %v601_v47 = vmul.f32 %v599_v21, %v503_v42  ;;  %v639_v20 = vstv %s1057_s8  ;;  %v663_v21 = vstv %s1062_s10 }
  0xe2   : > { %v609_v45 = vadd.f32 %v607_v39, %v583_v38  ;;  %v616_v51 = vadd.f32 %v614_v40, %v588_v43  ;;  %v640_v28 = vmul.f32 %v639_v20, %v1004_v14 }
  0xe3   : > { %v596_v53 = vadd.f32 %v594_v46, %v574_v48  ;;  %v603_v54 = vadd.f32 %v601_v47, %v579_v49  ;;  %v646_v46 = vmul.f32 %v644_v23, %v1026_v19 }
  0xe4   : > { %v620_v50 = vadd.f32 %v618_v44, %v609_v45  ;;  %v641_v44 = vmul.f32 %v639_v20, %v1024_v18 }
  0xe5   : > { %v619_v4 = vadd.f32 %v603_v54, %v596_v53 }
  0xe6   : > { %v622_v52 = vadd.f32 %v620_v50, %v616_v51 }
  0xe7   : > { %v532_v55 = vpop.f32.mrf.mxu2  ;;  %v561_v56 = vpop.f32.mrf.mxu3 }
  0xe8   : > { %624 = vst [vmem:[%s1069_s14] sm:$0xff] %v622_v52  ;;  %v608_v60 = vmul.f32 %v606_v31, %v532_v55  ;;  %v615_v61 = vmul.f32 %v613_v32, %v561_v56  ;;  %v477_v62 = vpop.f32.mrf.mxu0  ;;  %v506_v63 = vpop.f32.mrf.mxu1 }
  0xe9   : > { %v650_v5 = vmul.f32 %v649_v57, %v477_v62  ;;  %v657_v6 = vmul.f32 %v656_v58, %v506_v63 }
  0xea   : > { %v610_v0 = vadd.f32 %v608_v60, %v584_v59  ;;  %v617_v10 = vadd.f32 %v615_v61, %v589_v1 }
  0xeb   : > { %v652_v25 = vadd.f32 %v650_v5, %v630_v7  ;;  %v659_v11 = vadd.f32 %v657_v6, %v635_v8 }
  0xec   : > { %v621_v9 = vadd.f32 %v619_v4, %v610_v0 }
  0xed   : > { %v675_v32 = vadd.f32 %v659_v11, %v652_v25 }
  0xee   : > { %v623_v24 = vadd.f32 %v621_v9, %v617_v10 }
  0xef   : > { %v535_v26 = vpop.f32.mrf.mxu2  ;;  %v564_v27 = vpop.f32.mrf.mxu3 }
  0xf0   : > { %625 = vst [vmem:[%s1069_s14 + $0x8] sm:$0xff] %v623_v24  ;;  %v664_v29 = vmul.f32 %v663_v21, %v535_v26  ;;  %v671_v30 = vmul.f32 %v670_v22, %v564_v27  ;;  %v480_v31 = vpop.f32.mrf.mxu0  ;;  %v509_v12 = vpop.f32.mrf.mxu1 }
  0xf1   : > { %v651_v34 = vmul.f32 %v649_v57, %v480_v31  ;;  %v658_v35 = vmul.f32 %v656_v58, %v509_v12 }
  0xf2   : > { %v666_v33 = vadd.f32 %v664_v29, %v640_v28  ;;  %v673_v39 = vadd.f32 %v671_v30, %v645_v13 }
  0xf3   : > { %v653_v40 = vadd.f32 %v651_v34, %v631_v36  ;;  %v660_v41 = vadd.f32 %v658_v35, %v636_v37 }
  0xf4   : > { %v677_v38 = vadd.f32 %v675_v32, %v666_v33 }
  0xf5   : > { %v676_v47 = vadd.f32 %v660_v41, %v653_v40 }
  0xf6   : > { %v679_v14 = vadd.f32 %v677_v38, %v673_v39 }
  0xf7   : > { %v538_v42 = vpop.f32.mrf.mxu2  ;;  %v567_v43 = vpop.f32.mrf.mxu3 }
  0xf8   : > { %681 = vst [vmem:[%s1069_s14 + $0x10] sm:$0xff] %v679_v14  ;;  %v665_v15 = vmul.f32 %v663_v21, %v538_v42  ;;  %v672_v45 = vmul.f32 %v670_v22, %v567_v43 }
  0xfa   : > { %v667_v48 = vadd.f32 %v665_v15, %v641_v44  ;;  %v674_v49 = vadd.f32 %v672_v45, %v646_v46 }
  0xfc   : > { %v678_v16 = vadd.f32 %v676_v47, %v667_v48 }
  0xfe   : > { %v680_v17 = vadd.f32 %v678_v16, %v674_v49 }
 0x100   : > { %682 = vst [vmem:[%s1069_s14 + $0x18] sm:$0xff] %v680_v17 }
 0x101 PF: > { %s15_s12 = sadd.s32 1, %s875_s12  }
 0x102   : > { %p12_p7 = scmp.ge.s32.totalorder %s15_s12, 4  }
 0x104   :  { %14 = sbr.rel (!%p12_p7) target bundleno = 2 (0x2), region = 72 }
 0x109   :  { %705 = vsyncpa [#allocation3], 1 }
 0x10a   :  { %707 = vsyncpa [#allocation3 + $0x1], 1 }
 0x10b   :  { %708 = vsyncpa [#allocation4], 1 }
 0x10c   :  { %710 = vsyncpa [#allocation4 + $0x1], 1 }

</bundles_post_ra>
